<compile_context>
chip_gen: v7x
topology: tpu7x:2x2x1
jax: 0.10.0
libtpu: 0.0.40
codegen_flags: <defaults>
</compile_context>

<pallas_src>
import jax
import jax.numpy as jnp
from jax.experimental import pallas as pl
from jax.experimental.pallas import tpu as pltpu


def _encoder_mlp_kernel(x_ref, w1_ref, b1_ref, w2_ref, b2_ref, w3_ref, b3_ref,
                        o_ref):
    """relu(x@W1 + b1) -> relu(.@W2 + b2) -> .@W3 + b3 for one batch tile.

    x already holds concat([xi, y]); biases are f32 and added to the f32 MXU
    accumulator before the (f32) ReLU, regardless of the compute dtype.
    """
    h = jnp.dot(x_ref[...], w1_ref[...], preferred_element_type=jnp.float32)
    h = jnp.maximum(h + b1_ref[...], 0.0)                        # ReLU (f32)

    h = jnp.dot(h.astype(w2_ref.dtype), w2_ref[...],
                preferred_element_type=jnp.float32)
    h = jnp.maximum(h + b2_ref[...], 0.0)                        # ReLU (f32)

    out = jnp.dot(h.astype(w3_ref.dtype), w3_ref[...],
                  preferred_element_type=jnp.float32)
    o_ref[...] = (out + b3_ref[...]).astype(o_ref.dtype)


def _round_up(n, m):
    return ((n + m - 1) // m) * m


def encoder_network_forward(xi, y, params, *, batch_tile=256, use_bf16=False,
                            out_dtype=None):
    """Pallas implementation of EncoderNetwork.forward.

    xi: [B, design_dim], y: [B, observation_dim]  ->  [B, encoding_dim]
    """
    w1, b1, w2, b2, w3, b3 = params
    B, design_dim = xi.shape
    observation_dim = y.shape[1]
    in_dim = design_dim + observation_dim
    hidden_dim = w1.shape[1]
    encoding_dim = w3.shape[1]
    assert w1.shape[0] == in_dim and w2.shape == (hidden_dim, hidden_dim)
    assert w3.shape[0] == hidden_dim

    LANE = 128
    hid_p = _round_up(hidden_dim, LANE)        # lane-dense hidden width
    enc_p = _round_up(encoding_dim, LANE)      # lane-dense output width

    compute_dtype = jnp.bfloat16 if use_bf16 else xi.dtype
    out_dtype = xi.dtype if out_dtype is None else out_dtype

    # --- adaptive batch tiling ------------------------------------------------
    # Sublane tile is 8 rows for 32-bit, 16 for bf16; every block row count must
    # be a multiple of it.  Shrink the tile for small B (avoid redundant work)
    # and aim for a >=2-step grid so dimension_semantics=("parallel",) can
    # spread work over both v7x TensorCores.
    sublane = 16 if compute_dtype == jnp.bfloat16 else 8
    batch_tile = _round_up(max(int(batch_tile), sublane), sublane)
    two_way = _round_up(pl.cdiv(B, 2), sublane)
    bt = min(batch_tile, max(two_way, sublane))
    B_pad = _round_up(B, bt)
    grid = (B_pad // bt,)

    # --- wrapper-side layout prep (zero padding only; math unchanged) ---------
    def pad2(a, rows, cols, dt):
        return jnp.pad(a, ((0, rows - a.shape[0]),
                           (0, cols - a.shape[1]))).astype(dt)

    # Fold torch.cat([xi, y], -1) into one input array so layer 1 is one dot.
    x = jnp.concatenate([xi, y], axis=-1)
    x_p = jnp.pad(x, ((0, B_pad - B), (0, 0))).astype(compute_dtype)

    w1_p = pad2(w1, in_dim, hid_p, compute_dtype)
    w2_p = pad2(w2, hid_p, hid_p, compute_dtype)
    w3_p = pad2(w3, hid_p, enc_p, compute_dtype)

    # Biases stay f32 (added to the f32 accumulator), padded to lane width.
    b1_p = jnp.pad(b1, (0, hid_p - hidden_dim)).reshape(1, hid_p).astype(jnp.float32)
    b2_p = jnp.pad(b2, (0, hid_p - hidden_dim)).reshape(1, hid_p).astype(jnp.float32)
    b3_p = jnp.pad(b3, (0, enc_p - encoding_dim)).reshape(1, enc_p).astype(jnp.float32)

    # --- VMEM budget (double-buffered streaming tiles + resident weights) -----
    w_bytes = jnp.dtype(compute_dtype).itemsize
    o_bytes = jnp.dtype(out_dtype).itemsize
    vmem_need = (2 * bt * in_dim * w_bytes                      # x tiles
                 + 2 * bt * enc_p * o_bytes                     # out tiles
                 + 2 * (in_dim * hid_p + hid_p * hid_p + hid_p * enc_p) * w_bytes
                 + 2 * 3 * max(hid_p, enc_p) * 4                # biases
                 + 4 * bt * hid_p * 4)                          # f32 activations
    vmem_limit = int(min(max(2 * vmem_need, 8 * 2**20), 32 * 2**20))

    def _call(weight_mode):
        # Resident operands: constant index_map; optionally single-buffered.
        def full(r, c):
            return pl.BlockSpec((r, c), lambda i: (0, 0),
                                pipeline_mode=weight_mode)

        return pl.pallas_call(
            _encoder_mlp_kernel,
            out_shape=jax.ShapeDtypeStruct((B_pad, enc_p), out_dtype),
            grid=grid,
            in_specs=[
                pl.BlockSpec((bt, in_dim), lambda i: (i, 0)),   # concat(xi, y)
                full(in_dim, hid_p),                            # W1
                full(1, hid_p),                                 # b1
                full(hid_p, hid_p),                             # W2
                full(1, hid_p),                                 # b2
                full(hid_p, enc_p),                             # W3
                full(1, enc_p),                                 # b3
            ],
            out_specs=pl.BlockSpec((bt, enc_p), lambda i: (i, 0)),
            compiler_params=pltpu.CompilerParams(
                dimension_semantics=("parallel",),
                vmem_limit_bytes=vmem_limit),
        )(x_p, w1_p, b1_p, w2_p, b2_p, w3_p, b3_p)

    try:
        # Weights never change across the grid -> single buffer (VMEM saver,
        # mainly relevant on v7x at large hidden_dim).
        out = _call(pl.Buffered(buffer_count=1))
    except Exception:
        # TODO(synk): some jax builds reject buffer_count=1; fall back to the
        # default double-buffered pipeline (correctness identical).
        out = _call(None)

    # Strip batch + lane padding.
    return out[:B, :encoding_dim]


def init_encoder_params(key, design_dim, observation_dim,
                        hidden_dim=128, encoding_dim=64, hidden_depth=2):
    """Deterministic parameter init mirroring the nn.Linear shapes.

    Returns weights already transposed to [in, out]."""
    assert hidden_depth == 2, "this script wires the hidden_depth=2 case"
    input_dim = design_dim + observation_dim
    keys = jax.random.split(key, 6)

    def linear(kw, kb, fan_in, fan_out):
        # PyTorch default: U(-1/sqrt(fan_in), 1/sqrt(fan_in))
        bound = 1.0 / jnp.sqrt(jnp.float32(fan_in))
        w = jax.random.uniform(kw, (fan_in, fan_out), jnp.float32, -bound, bound)
        b = jax.random.uniform(kb, (fan_out,), jnp.float32, -bound, bound)
        return w, b

    w1, b1 = linear(keys[0], keys[1], input_dim, hidden_dim)
    w2, b2 = linear(keys[2], keys[3], hidden_dim, hidden_dim)
    w3, b3 = linear(keys[4], keys[5], hidden_dim, encoding_dim)
    return (w1, b1, w2, b2, w3, b3)


def _reference_forward(xi, y, params):
    """Pure-JAX reference (semantics of the PyTorch module)."""
    w1, b1, w2, b2, w3, b3 = params
    x = jnp.concatenate([xi, y], axis=-1)
    x = jnp.maximum(x @ w1 + b1, 0.0)
    x = jnp.maximum(x @ w2 + b2, 0.0)
    return x @ w3 + b3


if __name__ == "__main__":
    # Small shapes consistent with the module.
    batch = 16
    design_dim = 4
    observation_dim = 4
    hidden_dim = 32
    encoding_dim = 16
    hidden_depth = 2

    key = jax.random.PRNGKey(0)
    k_xi, k_y, k_params = jax.random.split(key, 3)

    xi = jax.random.normal(k_xi, (batch, design_dim), jnp.float32)
    y = jax.random.normal(k_y, (batch, observation_dim), jnp.float32)

    params = init_encoder_params(k_params, design_dim, observation_dim,
                                 hidden_dim=hidden_dim,
                                 encoding_dim=encoding_dim,
                                 hidden_depth=hidden_depth)

    ref = _reference_forward(xi, y, params)

    # f32 path (tight tolerance); adaptive tiling gives a 2-step, 8-row grid.
    out = encoder_network_forward(xi, y, params, use_bf16=False)
    out = jax.block_until_ready(out)
    assert out.shape == (batch, encoding_dim)
    assert jnp.allclose(out, ref, atol=1e-5, rtol=1e-5)

    # bf16-fed MXU path (f32 accumulation, f32 bias/ReLU), looser tolerance.
    out_bf16 = encoder_network_forward(xi, y, params, use_bf16=True)
    out_bf16 = jax.block_until_ready(out_bf16)
    assert out_bf16.shape == (batch, encoding_dim)
    assert jnp.allclose(out_bf16, ref, atol=5e-2, rtol=5e-2)

    # bf16 compute + bf16 output (halved writeback DMA).
    out_bf16_o = encoder_network_forward(xi, y, params, use_bf16=True,
                                         out_dtype=jnp.bfloat16)
    out_bf16_o = jax.block_until_ready(out_bf16_o)
    assert out_bf16_o.shape == (batch, encoding_dim)
    assert out_bf16_o.dtype == jnp.bfloat16
    assert jnp.allclose(out_bf16_o.astype(jnp.float32), ref, atol=5e-2, rtol=5e-2)

    print("KERNEL_OK")
</pallas_src>

<mosaic_0001>
module attributes {stable_mosaic.version = 11 : i64} {
  func.func @_encoder_mlp_kernel(%arg0: i32, %arg1: memref<8x8xf32, #tpu.memory_space<vmem>>, %arg2: memref<8x128xf32, #tpu.memory_space<vmem>>, %arg3: memref<1x128xf32, #tpu.memory_space<vmem>>, %arg4: memref<128x128xf32, #tpu.memory_space<vmem>>, %arg5: memref<1x128xf32, #tpu.memory_space<vmem>>, %arg6: memref<128x128xf32, #tpu.memory_space<vmem>>, %arg7: memref<1x128xf32, #tpu.memory_space<vmem>>, %arg8: memref<8x128xf32, #tpu.memory_space<vmem>>) attributes {dimension_semantics = [#tpu.dimension_semantics<parallel>], iteration_bounds = array<i64: 2>, scalar_prefetch = 0 : i64, scratch_operands = 0 : i64, tpu.core_type = #tpu.core_type<tc>, window_params = [{transform_indices = @transform_0, window_bounds = array<i64: 8, 8>}, {pipeline_mode = #tpu.pipeline_mode<synchronous>, transform_indices = @transform_1, window_bounds = array<i64: 8, 128>}, {pipeline_mode = #tpu.pipeline_mode<synchronous>, transform_indices = @transform_2, window_bounds = array<i64: 1, 128>}, {pipeline_mode = #tpu.pipeline_mode<synchronous>, transform_indices = @transform_3, window_bounds = array<i64: 128, 128>}, {pipeline_mode = #tpu.pipeline_mode<synchronous>, transform_indices = @transform_4, window_bounds = array<i64: 1, 128>}, {pipeline_mode = #tpu.pipeline_mode<synchronous>, transform_indices = @transform_5, window_bounds = array<i64: 128, 128>}, {pipeline_mode = #tpu.pipeline_mode<synchronous>, transform_indices = @transform_6, window_bounds = array<i64: 1, 128>}, {transform_indices = @transform_7, window_bounds = array<i64: 8, 128>}]} {
    %c0 = arith.constant 0 : index
    %c0_0 = arith.constant 0 : index
    %0 = vector.load %arg1[%c0, %c0_0] : memref<8x8xf32, #tpu.memory_space<vmem>>, vector<8x8xf32>
    %c0_1 = arith.constant 0 : index
    %c0_2 = arith.constant 0 : index
    %1 = vector.load %arg2[%c0_1, %c0_2] : memref<8x128xf32, #tpu.memory_space<vmem>>, vector<8x128xf32>
    %cst = arith.constant dense<0.000000e+00> : vector<8x128xf32>
    %2 = tpu.matmul %0, %1, %cst {dimension_numbers = #tpu.dot_dimension_numbers<[1], [0], [0], [1], [0, 0, 1, 1], [], []>} : vector<8x8xf32>, vector<8x128xf32>, vector<8x128xf32> -> vector<8x128xf32>
    %c0_3 = arith.constant 0 : index
    %c0_4 = arith.constant 0 : index
    %3 = vector.load %arg3[%c0_3, %c0_4] : memref<1x128xf32, #tpu.memory_space<vmem>>, vector<1x128xf32>
    %4 = vector.broadcast %3 : vector<1x128xf32> to vector<8x128xf32>
    %5 = arith.addf %2, %4 : vector<8x128xf32>
    %cst_5 = arith.constant 0.000000e+00 : f32
    %6 = vector.broadcast %cst_5 : f32 to vector<8x128xf32>
    %7 = arith.maximumf %5, %6 : vector<8x128xf32>
    %c0_6 = arith.constant 0 : index
    %c0_7 = arith.constant 0 : index
    %8 = vector.load %arg4[%c0_6, %c0_7] : memref<128x128xf32, #tpu.memory_space<vmem>>, vector<128x128xf32>
    %cst_8 = arith.constant dense<0.000000e+00> : vector<8x128xf32>
    %9 = tpu.matmul %7, %8, %cst_8 {dimension_numbers = #tpu.dot_dimension_numbers<[1], [0], [0], [1], [0, 0, 1, 1], [], []>} : vector<8x128xf32>, vector<128x128xf32>, vector<8x128xf32> -> vector<8x128xf32>
    %c0_9 = arith.constant 0 : index
    %c0_10 = arith.constant 0 : index
    %10 = vector.load %arg5[%c0_9, %c0_10] : memref<1x128xf32, #tpu.memory_space<vmem>>, vector<1x128xf32>
    %11 = vector.broadcast %10 : vector<1x128xf32> to vector<8x128xf32>
    %12 = arith.addf %9, %11 : vector<8x128xf32>
    %cst_11 = arith.constant 0.000000e+00 : f32
    %13 = vector.broadcast %cst_11 : f32 to vector<8x128xf32>
    %14 = arith.maximumf %12, %13 : vector<8x128xf32>
    %c0_12 = arith.constant 0 : index
    %c0_13 = arith.constant 0 : index
    %15 = vector.load %arg6[%c0_12, %c0_13] : memref<128x128xf32, #tpu.memory_space<vmem>>, vector<128x128xf32>
    %cst_14 = arith.constant dense<0.000000e+00> : vector<8x128xf32>
    %16 = tpu.matmul %14, %15, %cst_14 {dimension_numbers = #tpu.dot_dimension_numbers<[1], [0], [0], [1], [0, 0, 1, 1], [], []>} : vector<8x128xf32>, vector<128x128xf32>, vector<8x128xf32> -> vector<8x128xf32>
    %c0_15 = arith.constant 0 : index
    %c0_16 = arith.constant 0 : index
    %17 = vector.load %arg7[%c0_15, %c0_16] : memref<1x128xf32, #tpu.memory_space<vmem>>, vector<1x128xf32>
    %18 = vector.broadcast %17 : vector<1x128xf32> to vector<8x128xf32>
    %19 = arith.addf %16, %18 : vector<8x128xf32>
    %c0_17 = arith.constant 0 : index
    %c0_18 = arith.constant 0 : index
    %20 = vector.load %arg8[%c0_17, %c0_18] : memref<8x128xf32, #tpu.memory_space<vmem>>, vector<8x128xf32>
    tpu.vector_store %arg8[%c0_17, %c0_18], %19 {strides = array<i32>} : memref<8x128xf32, #tpu.memory_space<vmem>>, vector<8x128xf32>,
    return
  }
  func.func @transform_0(%arg0: i32) -> (i32, i32) {
    %c0_i32 = arith.constant 0 : i32
    %c0_i32_0 = arith.constant 0 : i32
    return %arg0, %c0_i32 : i32, i32
  }
  func.func @transform_1(%arg0: i32) -> (i32, i32) {
    %c0_i32 = arith.constant 0 : i32
    %c0_i32_0 = arith.constant 0 : i32
    %c0_i32_1 = arith.constant 0 : i32
    return %c0_i32, %c0_i32_0 : i32, i32
  }
  func.func @transform_2(%arg0: i32) -> (i32, i32) {
    %c0_i32 = arith.constant 0 : i32
    %c0_i32_0 = arith.constant 0 : i32
    %c0_i32_1 = arith.constant 0 : i32
    return %c0_i32, %c0_i32_0 : i32, i32
  }
  func.func @transform_3(%arg0: i32) -> (i32, i32) {
    %c0_i32 = arith.constant 0 : i32
    %c0_i32_0 = arith.constant 0 : i32
    %c0_i32_1 = arith.constant 0 : i32
    return %c0_i32, %c0_i32_0 : i32, i32
  }
  func.func @transform_4(%arg0: i32) -> (i32, i32) {
    %c0_i32 = arith.constant 0 : i32
    %c0_i32_0 = arith.constant 0 : i32
    %c0_i32_1 = arith.constant 0 : i32
    return %c0_i32, %c0_i32_0 : i32, i32
  }
  func.func @transform_5(%arg0: i32) -> (i32, i32) {
    %c0_i32 = arith.constant 0 : i32
    %c0_i32_0 = arith.constant 0 : i32
    %c0_i32_1 = arith.constant 0 : i32
    return %c0_i32, %c0_i32_0 : i32, i32
  }
  func.func @transform_6(%arg0: i32) -> (i32, i32) {
    %c0_i32 = arith.constant 0 : i32
    %c0_i32_0 = arith.constant 0 : i32
    %c0_i32_1 = arith.constant 0 : i32
    return %c0_i32, %c0_i32_0 : i32, i32
  }
  func.func @transform_7(%arg0: i32) -> (i32, i32) {
    %c0_i32 = arith.constant 0 : i32
    %c0_i32_0 = arith.constant 0 : i32
    return %arg0, %c0_i32 : i32, i32
  }
}

module attributes {stable_mosaic.version = 11 : i64} {
  func.func @_encoder_mlp_kernel(%arg0: i32, %arg1: memref<8x8xf32, #tpu.memory_space<vmem>>, %arg2: memref<8x128xf32, #tpu.memory_space<vmem>>, %arg3: memref<1x128xf32, #tpu.memory_space<vmem>>, %arg4: memref<128x128xf32, #tpu.memory_space<vmem>>, %arg5: memref<1x128xf32, #tpu.memory_space<vmem>>, %arg6: memref<128x128xf32, #tpu.memory_space<vmem>>, %arg7: memref<1x128xf32, #tpu.memory_space<vmem>>, %arg8: memref<8x128xf32, #tpu.memory_space<vmem>>) attributes {dimension_semantics = [#tpu.dimension_semantics<parallel>], iteration_bounds = array<i64: 2>, scalar_prefetch = 0 : i64, scratch_operands = 0 : i64, tpu.core_type = #tpu.core_type<tc>, window_params = [{transform_indices = @transform_0, window_bounds = array<i64: 8, 8>}, {pipeline_mode = #tpu.pipeline_mode<synchronous>, transform_indices = @transform_1, window_bounds = array<i64: 8, 128>}, {pipeline_mode = #tpu.pipeline_mode<synchronous>, transform_indices = @transform_2, window_bounds = array<i64: 1, 128>}, {pipeline_mode = #tpu.pipeline_mode<synchronous>, transform_indices = @transform_3, window_bounds = array<i64: 128, 128>}, {pipeline_mode = #tpu.pipeline_mode<synchronous>, transform_indices = @transform_4, window_bounds = array<i64: 1, 128>}, {pipeline_mode = #tpu.pipeline_mode<synchronous>, transform_indices = @transform_5, window_bounds = array<i64: 128, 128>}, {pipeline_mode = #tpu.pipeline_mode<synchronous>, transform_indices = @transform_6, window_bounds = array<i64: 1, 128>}, {transform_indices = @transform_7, window_bounds = array<i64: 8, 128>}]} {
    %c0 = arith.constant 0 : index
    %c0_0 = arith.constant 0 : index
    %0 = vector.load %arg1[%c0, %c0_0] : memref<8x8xf32, #tpu.memory_space<vmem>>, vector<8x8xf32>
    %c0_1 = arith.constant 0 : index
    %c0_2 = arith.constant 0 : index
    %1 = vector.load %arg2[%c0_1, %c0_2] : memref<8x128xf32, #tpu.memory_space<vmem>>, vector<8x128xf32>
    %cst = arith.constant dense<0.000000e+00> : vector<8x128xf32>
    %2 = tpu.matmul %0, %1, %cst {dimension_numbers = #tpu.dot_dimension_numbers<[1], [0], [0], [1], [0, 0, 1, 1], [], []>} : vector<8x8xf32>, vector<8x128xf32>, vector<8x128xf32> -> vector<8x128xf32>
    %c0_3 = arith.constant 0 : index
    %c0_4 = arith.constant 0 : index
    %3 = vector.load %arg3[%c0_3, %c0_4] : memref<1x128xf32, #tpu.memory_space<vmem>>, vector<1x128xf32>
    %4 = vector.broadcast %3 : vector<1x128xf32> to vector<8x128xf32>
    %5 = arith.addf %2, %4 : vector<8x128xf32>
    %cst_5 = arith.constant 0.000000e+00 : f32
    %6 = vector.broadcast %cst_5 : f32 to vector<8x128xf32>
    %7 = arith.maximumf %5, %6 : vector<8x128xf32>
    %c0_6 = arith.constant 0 : index
    %c0_7 = arith.constant 0 : index
    %8 = vector.load %arg4[%c0_6, %c0_7] : memref<128x128xf32, #tpu.memory_space<vmem>>, vector<128x128xf32>
    %cst_8 = arith.constant dense<0.000000e+00> : vector<8x128xf32>
    %9 = tpu.matmul %7, %8, %cst_8 {dimension_numbers = #tpu.dot_dimension_numbers<[1], [0], [0], [1], [0, 0, 1, 1], [], []>} : vector<8x128xf32>, vector<128x128xf32>, vector<8x128xf32> -> vector<8x128xf32>
    %c0_9 = arith.constant 0 : index
    %c0_10 = arith.constant 0 : index
    %10 = vector.load %arg5[%c0_9, %c0_10] : memref<1x128xf32, #tpu.memory_space<vmem>>, vector<1x128xf32>
    %11 = vector.broadcast %10 : vector<1x128xf32> to vector<8x128xf32>
    %12 = arith.addf %9, %11 : vector<8x128xf32>
    %cst_11 = arith.constant 0.000000e+00 : f32
    %13 = vector.broadcast %cst_11 : f32 to vector<8x128xf32>
    %14 = arith.maximumf %12, %13 : vector<8x128xf32>
    %c0_12 = arith.constant 0 : index
    %c0_13 = arith.constant 0 : index
    %15 = vector.load %arg6[%c0_12, %c0_13] : memref<128x128xf32, #tpu.memory_space<vmem>>, vector<128x128xf32>
    %cst_14 = arith.constant dense<0.000000e+00> : vector<8x128xf32>
    %16 = tpu.matmul %14, %15, %cst_14 {dimension_numbers = #tpu.dot_dimension_numbers<[1], [0], [0], [1], [0, 0, 1, 1], [], []>} : vector<8x128xf32>, vector<128x128xf32>, vector<8x128xf32> -> vector<8x128xf32>
    %c0_15 = arith.constant 0 : index
    %c0_16 = arith.constant 0 : index
    %17 = vector.load %arg7[%c0_15, %c0_16] : memref<1x128xf32, #tpu.memory_space<vmem>>, vector<1x128xf32>
    %18 = vector.broadcast %17 : vector<1x128xf32> to vector<8x128xf32>
    %19 = arith.addf %16, %18 : vector<8x128xf32>
    %c0_17 = arith.constant 0 : index
    %c0_18 = arith.constant 0 : index
    %20 = vector.load %arg8[%c0_17, %c0_18] : memref<8x128xf32, #tpu.memory_space<vmem>>, vector<8x128xf32>
    tpu.vector_store %arg8[%c0_17, %c0_18], %19 {strides = array<i32>} : memref<8x128xf32, #tpu.memory_space<vmem>>, vector<8x128xf32>,
    return
  }
  func.func @transform_0(%arg0: i32) -> (i32, i32) {
    %c0_i32 = arith.constant 0 : i32
    %c0_i32_0 = arith.constant 0 : i32
    return %arg0, %c0_i32 : i32, i32
  }
  func.func @transform_1(%arg0: i32) -> (i32, i32) {
    %c0_i32 = arith.constant 0 : i32
    %c0_i32_0 = arith.constant 0 : i32
    %c0_i32_1 = arith.constant 0 : i32
    return %c0_i32, %c0_i32_0 : i32, i32
  }
  func.func @transform_2(%arg0: i32) -> (i32, i32) {
    %c0_i32 = arith.constant 0 : i32
    %c0_i32_0 = arith.constant 0 : i32
    %c0_i32_1 = arith.constant 0 : i32
    return %c0_i32, %c0_i32_0 : i32, i32
  }
  func.func @transform_3(%arg0: i32) -> (i32, i32) {
    %c0_i32 = arith.constant 0 : i32
    %c0_i32_0 = arith.constant 0 : i32
    %c0_i32_1 = arith.constant 0 : i32
    return %c0_i32, %c0_i32_0 : i32, i32
  }
  func.func @transform_4(%arg0: i32) -> (i32, i32) {
    %c0_i32 = arith.constant 0 : i32
    %c0_i32_0 = arith.constant 0 : i32
    %c0_i32_1 = arith.constant 0 : i32
    return %c0_i32, %c0_i32_0 : i32, i32
  }
  func.func @transform_5(%arg0: i32) -> (i32, i32) {
    %c0_i32 = arith.constant 0 : i32
    %c0_i32_0 = arith.constant 0 : i32
    %c0_i32_1 = arith.constant 0 : i32
    return %c0_i32, %c0_i32_0 : i32, i32
  }
  func.func @transform_6(%arg0: i32) -> (i32, i32) {
    %c0_i32 = arith.constant 0 : i32
    %c0_i32_0 = arith.constant 0 : i32
    %c0_i32_1 = arith.constant 0 : i32
    return %c0_i32, %c0_i32_0 : i32, i32
  }
  func.func @transform_7(%arg0: i32) -> (i32, i32) {
    %c0_i32 = arith.constant 0 : i32
    %c0_i32_0 = arith.constant 0 : i32
    return %arg0, %c0_i32 : i32, i32
  }
}

</mosaic_0001>

<bundles_post_ra>
// kernel: tpu_custom_call.1
= control target key start
LH: loop header
LB: loop body
LE: loop exit
PB: predicated region body
PF: predicated region fallthrough
CT: control target
= control target key end

     0   :  { %12 = vsyncpa [#allocation3], 0  ;;  %s1292_s0 = inlined_call_operand.vmem [shape: f32[16,8], index: 0, kind: input, shape index: {}]   ;;  %s1293_s1 = inlined_call_operand.vmem [shape: f32[8,128], index: 1, kind: input, shape index: {}]   ;;  %s1294_s2 = inlined_call_operand.vmem [shape: f32[1,128], index: 2, kind: input, shape index: {}]   ;;  %s1295_s3 = inlined_call_operand.hbm [shape: f32[128,128], index: 3, kind: input, shape index: {}]   ;;  %s1296_s4 = inlined_call_operand.vmem [shape: f32[1,128], index: 4, kind: input, shape index: {}]   ;;  %s1297_s5 = inlined_call_operand.hbm [shape: f32[128,128], index: 5, kind: input, shape index: {}]   ;;  %s1298_s6 = inlined_call_operand.vmem [shape: f32[1,128], index: 6, kind: input, shape index: {}]   ;;  %s1299_s7 = inlined_call_operand.hbm [shape: f32[16,128], index: 7, kind: output, shape index: {}]  }
   0x1   :  { %13 = vsyncpa [#allocation6], 0 }
   0x2   :  { %14 = vsyncpa [#allocation4], 0 }
   0x3   :  { %16 = vsyncpa [#allocation4 + $0x1], 0  ;;  %s1089_s24 = smov 0   ;;  %s1091_s25 = smov 0  }
   0x4   :  { %s1093_s26 = smov 0   ;;  %s1095_s27 = smov 0  }
   0x5 LB: > { %s1110_s28 = sadd.s32 4294967295, %s1039_s27   ;;  %s671_s29 = sadd.s32 4294967294, %s1039_s27   ;;  %s1039_s27 = sphi %s1095_s27, %s1319_s27   ;;  %s1035_s26 = sphi %s1093_s26, %s1318_s26   ;;  %s1031_s25 = sphi %s1091_s25, %s1317_s25   ;;  %s1027_s24 = sphi %s1089_s24, %s1316_s24  }
   0x6   : > { %s1114_s30 = sadd.s32 1, %s1039_s27   ;;  %s181_s8 = sadd.s32 1, %s1035_s26 }
   0x7   : > { %s178_s9 = ssub.s32 %s1039_s27, %s1114_s30  ;;  %p191_p0 = scmp.ne.s32.totalorder %s1035_s26, %s1031_s25 }
   0x8   : > { %p179_p1 = scmp.eq.s32.totalorder %s178_s9, 0  ;;  %p192_p2 = scmp.eq.s32.totalorder %s1110_s28, 1 }
   0x9   : > { %p197_p3 = scmp.ne.s32.totalorder %s1031_s25, %s1027_s24  ;;  %p198_p4 = scmp.eq.s32.totalorder %s671_s29, 1 }
   0xa   : > { %s1125_s10 = scalar_select %p179_p1, %s1035_s26, %s181_s8  }
   0xb   : > { %p1127_p5 = por %p192_p2, %p191_p0  ;;  %p1131_p6 = por %p198_p4, %p197_p3 }
   0xc   : > { %1303 = sst [smem:[#allocation11_spill]] %s1125_s10  ;;  %p672_p7 = scmp.ge.s32.totalorder %s1039_s27, 1 }
   0xd   : > { %s1304_s11 = scalar_select %p1127_p5, 1, 0 }
   0xe   : > { %s1305_s12 = scalar_select %p1131_p6, 1, 0 }
   0xf   : > { %p205_p8 = scmp.lt.s32.totalorder %s1039_s27, 3  ;;  %p1300_p9 = scmp.eq.s32.totalorder %s1110_s28, 0 }
  0x10   : > { %s1041_s14 = smov [#allocation2]   ;;  %s1042_s17 = smov [#allocation5]  }
  0x11   : > { %p1138_p10 = pnand %p672_p7, %p205_p8  ;;  %s223_s15 = sshll.u32 %s1041_s14, 4  ;;  %s224_s15 = int_to_ptr.vmem [resolvable:$true] %s223_s15 }
  0x12   : > { %s239_s18 = sshll.u32 %s1042_s17, 4  ;;  %s913_s21 = scalar_lea.hbm %s1295_s3, 2048  ;;  %s1150_s18 = int_to_ptr.vmem [resolvable:$true] %s239_s18 }
  0x13   : > { %s1306_s13 = scalar_select %p1138_p10, 1, 0 }
  0x14   : > { %p858_p11 = pneg %p1138_p10  ;;  %p914_p13 = scmp.ne.s32.totalorder %s1295_s3, %s913_s21 }
  0x15   : > { %p920_p3 = scmp.lt.u32.totalorder %s913_s21, %s1295_s3 }
  0x16   : > { %p1146_p12 = pnand %p1300_p9, %p858_p11 }
  0x18   : > { %p915_p0 = pneg %p1146_p12 }
  0x1a   : > { %p916_p1 = pnand %p915_p0, %p914_p13 }
  0x1c   : > { %p917_p2 = pneg %p916_p1 }
  0x1e   : > { %p922_p4 = pnand %p920_p3, %p917_p2 }
  0x20   : > { %925 = shalt.err (!%p922_p4)
}
  0x21   : > { %s926_s9 = scalar_lea.vmem %s224_s15, 2048  ;;  %p934_p9 = scmp.lt.s32.totalorder %s224_s15, %s224_s15 }
  0x22   : > { %p927_p7 = scmp.ne.s32.totalorder %s224_s15, %s926_s9  ;;  %p935_p6 = scmp.lt.s32.totalorder %s926_s9, %s926_s9 }
  0x24   : > { %p929_p8 = pnand %p927_p7, %p915_p0  ;;  %p936_p5 = por %p935_p6, %p934_p9 }
  0x26   : > { %p930_p11 = pneg %p929_p8 }
  0x28   : > { %p937_p10 = pnand %p936_p5, %p930_p11 }
  0x2a   : > { %940 = shalt.err (!%p937_p10)
}
  0x2b   : > { %s1043_s14 = smov 128   ;;  %s1044_s17 = smov 8  }
  0x2c   : > { %861 = dma.hbm_to_vmem [thread:$0]  (!%p1146_p12), %s1295_s3, 2048, %s224_s15, [#allocation3], %s1043_s14, %s1043_s14, %s1044_s17  }
  0x2d   : > { %s941_s23 = scalar_lea.hbm %s1297_s5, 2048 }
  0x2e   : > { %p942_p13 = scmp.ne.s32.totalorder %s1297_s5, %s941_s23  ;;  %p948_p9 = scmp.lt.u32.totalorder %s941_s23, %s1297_s5 }
  0x30   : > { %p944_p5 = pnand %p942_p13, %p915_p0 }
  0x32   : > { %p945_p6 = pneg %p944_p5 }
  0x34   : > { %p950_p10 = pnand %p948_p9, %p945_p6 }
  0x36   : > { %953 = shalt.err (!%p950_p10)
}
  0x37   : > { %s954_s15 = scalar_lea.vmem %s1150_s18, 2048  ;;  %p962_p4 = scmp.lt.s32.totalorder %s1150_s18, %s1150_s18 }
  0x38   : > { %p955_p1 = scmp.ne.s32.totalorder %s1150_s18, %s954_s15  ;;  %p963_p7 = scmp.lt.s32.totalorder %s954_s15, %s954_s15 }
  0x3a   : > { %p957_p2 = pnand %p955_p1, %p915_p0  ;;  %p964_p8 = por %p963_p7, %p962_p4 }
  0x3c   : > { %p958_p3 = pneg %p957_p2 }
  0x3e   : > { %p965_p11 = pnand %p964_p8, %p958_p3 }
  0x40   : > { %968 = shalt.err (!%p965_p11)
}
  0x41   : > { %864 = dma.hbm_to_vmem [thread:$0]  (!%p1146_p12), %s1297_s5, 2048, %s1150_s18, [#allocation6], %s1043_s14, %s1043_s14, %s1044_s17  }
  0x42   : > { %p1308_p13 = scmp.ne.s32.totalorder %s1306_s13, 0 }
  0x43   : > { %p1309_p5 = scmp.eq.s32.totalorder (!%p1308_p13), %s1110_s28, 0 }
  0x44   : > { %265 = sbr.rel (%p1308_p13) target bundleno = 747 (0x2eb), region = 48 }
  0x4b   : > { %1014 = dma.done.wait (%p1309_p5), [#allocation3], 2048   ;;  %p1310_p0 = pmov %p1309_p5 }
  0x4d   : > { %1016 = vsyncadd (%p1310_p0), [#allocation3], 4294965248  ;;  %p1311_p6 = pmov %p1310_p0 }
  0x4e   : > { %p1312_p9 = pmov %p1310_p0 }
  0x4f   : > { %1018 = dma.done.wait (%p1311_p6), [#allocation6], 2048  }
  0x50   : > { %1020 = vsyncadd (%p1312_p9), [#allocation6], 4294965248  ;;  %p300_p10 = scmp.lt.s32.totalorder %s1110_s28, 1  ;;  %v1045_v0 = vmov 0.0   ;;  %vm1046_vm0 = vmmov 0   ;;  %v1047_v1 = vmov 0.0|0.0  }
  0x51   : > { %725 = vmatprep.subr.mxu0 %v1045_v0  ;;  %727 = vmatprep.mubr.msk.f32.mxu0 %vm1046_vm0, %v1045_v0  ;;  %vm313_vm1 = vcmask 64512   ;;  %v305_v2 = vld [vmem:[%s1293_s1] sm:$0xff]  ;;  %v389_v5 = vld [vmem:[#allocation2 + $0x8] sm:$0xff]  ;;  %v390_v6 = vld [vmem:[#allocation2 + $0x10] sm:$0xff]  ;;  %s297_s9 = sand.u32 1, %s1031_s25   ;;  %p1313_p1 = scmp.ne.s32.totalorder %s1304_s11, 0 }
  0x52   : > { %s301_s13 = scalar_select %p300_p10, %s1110_s28, 1  ;;  %800 = vmatprep.subr.bf16.mxu1 %v1047_v1  ;;  %762 = vmatprep.mubr.msk.f32.mxu1 %vm1046_vm0, %v1045_v0  ;;  %v388_v4 = vld [vmem:[#allocation2] sm:$0xff]  ;;  %v391_v7 = vld [vmem:[#allocation2 + $0x18] sm:$0xff]  ;;  %v393_v11 = vld [vmem:[#allocation2 + $0x28] sm:$0xff] }
  0x53   : > { %726 = vmatpush3.msra.mxu0 %v305_v2  ;;  %v801_v8 = vpack.c.bf16 %v389_v5, %v388_v4  ;;  %v804_v9 = vpack.c.bf16 %v391_v7, %v390_v6  ;;  %v392_v10 = vld [vmem:[#allocation2 + $0x20] sm:$0xff]  ;;  %v394_v13 = vld [vmem:[#allocation2 + $0x30] sm:$0xff]  ;;  %v395_v14 = vld [vmem:[#allocation2 + $0x38] sm:$0xff]  ;;  %s679_s15 = sshll.u32 %s297_s9, 3  ;;  %s577_s21 = scalar_lea.sflag [#allocation4], %s297_s9 }
  0x54   : > { %s680_s16 = sshll.u32 %s301_s13, 3  ;;  %824 = vmatprep.subr.bf16.mxu0 %v1047_v1  ;;  %v807_v12 = vpack.c.bf16 %v393_v11, %v392_v10  ;;  %v810_v15 = vpack.c.bf16 %v395_v14, %v394_v13  ;;  %v396_v16 = vld [vmem:[#allocation2 + $0x40] sm:$0xff]  ;;  %v397_v17 = vld [vmem:[#allocation2 + $0x48] sm:$0xff]  ;;  %v398_v19 = vld [vmem:[#allocation2 + $0x50] sm:$0xff]  ;;  %s686_s13 = sshll.u32 %s1110_s28, 7 }
  0x55   : > { %s303_s17 = scalar_lea.vmem %s1292_s0, %s680_s16  ;;  %802 = vmatpush3.bf16.msra.mxu1 %v801_v8  ;;  %v813_v18 = vpack.c.bf16 %v397_v17, %v396_v16  ;;  %v399_v20 = vld [vmem:[#allocation2 + $0x58] sm:$0xff]  ;;  %v400_v22 = vld [vmem:[#allocation2 + $0x60] sm:$0xff]  ;;  %v401_v23 = vld [vmem:[#allocation2 + $0x68] sm:$0xff]  ;;  %s299_s16 = scalar_lea.vmem [#allocation7], %s679_s15 }
  0x56   : > { %v304_v3 = vld [vmem:[%s303_s17] sm:$0xff]  ;;  %803 = vmatprep.subr.bf16.mxu1 %v1047_v1  ;;  %v816_v21 = vpack.c.bf16 %v399_v20, %v398_v19  ;;  %v819_v24 = vpack.c.bf16 %v401_v23, %v400_v22  ;;  %v402_v25 = vld [vmem:[#allocation2 + $0x70] sm:$0xff]  ;;  %v403_v26 = vld [vmem:[#allocation2 + $0x78] sm:$0xff]  ;;  %s590_s18 = sshll.u32 %s299_s16, 4  ;;  %s1250_s20 = scalar_lea.hbm %s1299_s7, %s686_s13  ;;  %s1252_s18 = int_to_ptr.vmem [resolvable:$true] %s590_s18 }
  0x57   : > { %728 = vmatmul.mubr.msk.f32.vlgmr.msra.gmra.mrb[0].mxu0 %vm313_vm1, %v304_v3  ;;  %v822_v27 = vpack.c.bf16 %v403_v26, %v402_v25  ;;  %v482_v28 = vld [vmem:[#allocation5] sm:$0xff]  ;;  %v483_v29 = vld [vmem:[#allocation5 + $0x8] sm:$0xff]  ;;  %v484_v30 = vld [vmem:[#allocation5 + $0x10] sm:$0xff]  ;;  %s969_s22 = scalar_lea.vmem %s1252_s18, 128  ;;  %s1048_s28 = smov [#allocation7]  }
  0x58   : > { %797 = vmatprep.mubr.msk.f32.mxu0 %vm1046_vm0, %v1045_v0  ;;  %v825_v31 = vpack.c.bf16 %v483_v29, %v482_v28  ;;  %v485_v32 = vld [vmem:[#allocation5 + $0x18] sm:$0xff]  ;;  %v486_v34 = vld [vmem:[#allocation5 + $0x20] sm:$0xff]  ;;  %v487_v35 = vld [vmem:[#allocation5 + $0x28] sm:$0xff]  ;;  %p970_p12 = scmp.ne.s32.totalorder %s1252_s18, %s969_s22  ;;  %s973_s23 = sshll.u32 %s1048_s28, 4  ;;  %s974_s23 = int_to_ptr.vmem [resolvable:$false] %s973_s23 }
  0x59   : > { %805 = vmatpush3.bf16.msra.mxu1 %v804_v9  ;;  %v828_v33 = vpack.c.bf16 %v485_v32, %v484_v30  ;;  %v831_v36 = vpack.c.bf16 %v487_v35, %v486_v34  ;;  %v488_v37 = vld [vmem:[#allocation5 + $0x30] sm:$0xff]  ;;  %v489_v38 = vld [vmem:[#allocation5 + $0x38] sm:$0xff]  ;;  %v490_v40 = vld [vmem:[#allocation5 + $0x40] sm:$0xff]  ;;  %s975_s29 = scalar_lea.vmem %s974_s23, 256  ;;  %p976_p4 = scmp.lt.s32.totalorder %s1252_s18, %s974_s23 }
  0x5a   : > { %806 = vmatprep.subr.bf16.mxu1 %v1047_v1  ;;  %826 = vmatpush3.bf16.msra.mxu0 %v825_v31  ;;  %v834_v39 = vpack.c.bf16 %v489_v38, %v488_v37  ;;  %v491_v41 = vld [vmem:[#allocation5 + $0x48] sm:$0xff]  ;;  %v492_v43 = vld [vmem:[#allocation5 + $0x50] sm:$0xff]  ;;  %v493_v44 = vld [vmem:[#allocation5 + $0x58] sm:$0xff]  ;;  %p971_p2 = pnand %p970_p12, %p1313_p1  ;;  %p977_p7 = scmp.lt.s32.totalorder %s975_s29, %s969_s22 }
  0x5b   : > { %827 = vmatprep.subr.bf16.mxu0 %v1047_v1  ;;  %v837_v42 = vpack.c.bf16 %v491_v41, %v490_v40  ;;  %v840_v45 = vpack.c.bf16 %v493_v44, %v492_v43  ;;  %v494_v46 = vld [vmem:[#allocation5 + $0x60] sm:$0xff]  ;;  %v495_v47 = vld [vmem:[#allocation5 + $0x68] sm:$0xff]  ;;  %v496_v54 = vld [vmem:[#allocation5 + $0x70] sm:$0xff] }
  0x5c   : > { %v843_v48 = vpack.c.bf16 %v495_v47, %v494_v46  ;;  %v681_v49 = vld [vmem:[%s1294_s2] ss:$0 sm:$0xff]  ;;  %v497_v55 = vld [vmem:[#allocation5 + $0x78] sm:$0xff]  ;;  %p972_p3 = pneg %p971_p2  ;;  %p978_p8 = por %p977_p7, %p976_p4 }
  0x5d   : > { %808 = vmatpush3.bf16.msra.mxu1 %v807_v12  ;;  %v846_v56 = vpack.c.bf16 %v497_v55, %v496_v54  ;;  %v683_v57 = vld [vmem:[%s1296_s4] ss:$0 sm:$0xff] }
  0x5e   : > { %809 = vmatprep.subr.bf16.mxu1 %v1047_v1  ;;  %829 = vmatpush3.bf16.msra.mxu0 %v828_v33  ;;  %v684_v62 = vld [vmem:[%s1298_s6] ss:$0 sm:$0xff]  ;;  %p979_p11 = pnand %p978_p8, %p972_p3 }
  0x5f   : > { %830 = vmatprep.subr.bf16.mxu0 %v1047_v1 }
  0x61   : > { %811 = vmatpush3.bf16.msra.mxu1 %v810_v15 }
  0x62   : > { %812 = vmatprep.subr.bf16.mxu1 %v1047_v1  ;;  %832 = vmatpush3.bf16.msra.mxu0 %v831_v36 }
  0x63   : > { %833 = vmatprep.subr.bf16.mxu0 %v1047_v1 }
  0x65   : > { %814 = vmatpush3.bf16.msra.mxu1 %v813_v18 }
  0x66   : > { %815 = vmatprep.subr.bf16.mxu1 %v1047_v1  ;;  %835 = vmatpush3.bf16.msra.mxu0 %v834_v39 }
  0x67   : > { %836 = vmatprep.subr.bf16.mxu0 %v1047_v1 }
  0x69   : > { %817 = vmatpush3.bf16.msra.mxu1 %v816_v21 }
  0x6a   : > { %818 = vmatprep.subr.bf16.mxu1 %v1047_v1  ;;  %838 = vmatpush3.bf16.msra.mxu0 %v837_v42 }
  0x6b   : > { %839 = vmatprep.subr.bf16.mxu0 %v1047_v1 }
  0x6d   : > { %820 = vmatpush3.bf16.msra.mxu1 %v819_v24 }
  0x6e   : > { %821 = vmatprep.subr.bf16.mxu1 %v1047_v1  ;;  %841 = vmatpush3.bf16.msra.mxu0 %v840_v45 }
  0x6f   : > { %842 = vmatprep.subr.bf16.mxu0 %v1047_v1 }
  0x71   : > { %823 = vmatpush3.bf16.msra.mxu1 %v822_v27 }
  0x72   : > { %844 = vmatpush3.bf16.msra.mxu0 %v843_v48 }
  0x73   : > { %845 = vmatprep.subr.bf16.mxu0 %v1047_v1 }
  0x76   : > { %847 = vmatpush3.bf16.msra.mxu0 %v846_v56 }
 0x12a   : > { %v383_v50 = vpop.f32.mrb[0].mxu0 }
 0x12b   : > { %v384_v51 = vadd.f32 %v681_v49, %v383_v50  ;;  %v729_v52 = vpop.f32.mrb[1].mxu0 }
 0x12d   : > { %v387_v53 = vmax.f32 %v384_v51, 0.0 }
 0x12f   : > { %763 = vmatmul.mubr.f32.vlgmr.msra.gmra.mrb[0].mxu1 %v387_v53 }
 0x202   : > { %v477_v58 = vpop.f32.mrb[0].mxu1 }
 0x203   : > { %v478_v59 = vadd.f32 %v683_v57, %v477_v58  ;;  %v764_v60 = vpop.f32.mrb[1].mxu1 }
 0x205   : > { %v481_v61 = vmax.f32 %v478_v59, 0.0 }
 0x207   : > { %798 = vmatmul.mubr.f32.vlgmr.msra.gmra.mrb[2].mxu0 %v481_v61 }
 0x2da   : > { %v571_v63 = vpop.f32.mrb[2].mxu0 }
 0x2db   : > { %v572_v0 = vadd.f32 %v684_v62, %v571_v63  ;;  %v799_v1 = vpop.f32.mrb[3].mxu0 }
 0x2dd   : > { %575 = vst [vmem:[%s299_s16] sm:$0xff] %v572_v0 }
 0x2de   : > { %982 = shalt.err (!%p979_p11)
}
 0x2df   : > { %s983_s8 = scalar_lea.hbm %s1250_s20, 128  ;;  %s987_s10 = scalar_lea.hbm %s1299_s7, 256 }
 0x2e0   : > { %p984_p13 = scmp.ne.s32.totalorder %s1250_s20, %s983_s8  ;;  %p988_p6 = scmp.lt.u32.totalorder %s1250_s20, %s1299_s7 }
 0x2e1   : > { %p989_p9 = scmp.lt.u32.totalorder %s987_s10, %s983_s8  ;;  %p991_p12 = scmp.lt.u32.totalorder %s983_s8, %s1250_s20 }
 0x2e2   : > { %p985_p5 = pnand %p984_p13, %p1313_p1 }
 0x2e3   : > { %p990_p10 = por %p989_p9, %p988_p6 }
 0x2e4   : > { %p986_p0 = pneg %p985_p5 }
 0x2e5   : > { %p992_p2 = por %p991_p12, %p990_p10 }
 0x2e7   : > { %p993_p3 = pnand %p992_p2, %p986_p0 }
 0x2e9   : > { %996 = shalt.err (!%p993_p3)
}
 0x2ea   : > { %856 = dma.vmem_to_hbm [thread:$0]  (%p1313_p1), %s1252_s18, 128, %s1250_s20, %s577_s21  }
 0x2eb PF: > { %p873_p4 = scmp.ge.s32.totalorder %s1039_s27, 2  ;;  %s602_s16 = sand.u32 1, %s1027_s24  }
 0x2ec   : > { %p1314_p7 = scmp.ne.s32.totalorder %s1305_s12, 0  ;;  %s603_s14 = scalar_lea.sflag [#allocation4], %s602_s16 }
 0x2ee   : > { %p866_p8 = pnand %p873_p4, %p1314_p7 }
 0x2f0   : > { %1022 = dma.done.wait (!%p866_p8), %s603_s14, 128  }
 0x2f1   : > { %1024 = vsyncadd (!%p866_p8), %s603_s14, 4294967168  ;;  %s1315_s17 = sld [smem:[#allocation11_spill]]  ;;  %p19_p11 = scmp.ge.s32.totalorder %s1114_s30, 4  }
 0x2f2   : > { %s1316_s24 = smov %s1031_s25  ;;  %s1317_s25 = smov %s1035_s26 }
 0x2f3   : > { %s1319_s27 = smov %s1114_s30  ;;  %21 = sbr.rel (!%p19_p11) target bundleno = 5 (0x5), region = 92 }
 0x2f7   : > { %s1318_s26 = smov %s1315_s17 }
 0x2fa   :  { %608 = vsyncpa [#allocation3], 1 }
 0x2fb   :  { %610 = vsyncpa [#allocation3 + $0x1], 1 }
 0x2fc   :  { %611 = vsyncpa [#allocation6], 1 }
 0x2fd   :  { %612 = vsyncpa [#allocation4], 1 }
 0x2fe   :  { %614 = vsyncpa [#allocation4 + $0x1], 1 }

// kernel: tpu_custom_call.1
= control target key start
LH: loop header
LB: loop body
LE: loop exit
PB: predicated region body
PF: predicated region fallthrough
CT: control target
= control target key end

     0   :  { %12 = vsyncpa [#allocation3], 0  ;;  %s1292_s0 = inlined_call_operand.vmem [shape: f32[16,8], index: 0, kind: input, shape index: {}]   ;;  %s1293_s1 = inlined_call_operand.vmem [shape: f32[8,128], index: 1, kind: input, shape index: {}]   ;;  %s1294_s2 = inlined_call_operand.vmem [shape: f32[1,128], index: 2, kind: input, shape index: {}]   ;;  %s1295_s3 = inlined_call_operand.hbm [shape: f32[128,128], index: 3, kind: input, shape index: {}]   ;;  %s1296_s4 = inlined_call_operand.vmem [shape: f32[1,128], index: 4, kind: input, shape index: {}]   ;;  %s1297_s5 = inlined_call_operand.hbm [shape: f32[128,128], index: 5, kind: input, shape index: {}]   ;;  %s1298_s6 = inlined_call_operand.vmem [shape: f32[1,128], index: 6, kind: input, shape index: {}]   ;;  %s1299_s7 = inlined_call_operand.hbm [shape: f32[16,128], index: 7, kind: output, shape index: {}]  }
   0x1   :  { %13 = vsyncpa [#allocation6], 0 }
   0x2   :  { %14 = vsyncpa [#allocation4], 0 }
   0x3   :  { %16 = vsyncpa [#allocation4 + $0x1], 0  ;;  %s1089_s24 = smov 0   ;;  %s1091_s25 = smov 0  }
   0x4   :  { %s1093_s26 = smov 0   ;;  %s1095_s27 = smov 0  }
   0x5 LB: > { %s1110_s28 = sadd.s32 4294967295, %s1039_s27   ;;  %s671_s29 = sadd.s32 4294967294, %s1039_s27   ;;  %s1039_s27 = sphi %s1095_s27, %s1319_s27   ;;  %s1035_s26 = sphi %s1093_s26, %s1318_s26   ;;  %s1031_s25 = sphi %s1091_s25, %s1317_s25   ;;  %s1027_s24 = sphi %s1089_s24, %s1316_s24  }
   0x6   : > { %s1114_s30 = sadd.s32 1, %s1039_s27   ;;  %s181_s8 = sadd.s32 1, %s1035_s26 }
   0x7   : > { %s178_s9 = ssub.s32 %s1039_s27, %s1114_s30  ;;  %p191_p0 = scmp.ne.s32.totalorder %s1035_s26, %s1031_s25 }
   0x8   : > { %p179_p1 = scmp.eq.s32.totalorder %s178_s9, 0  ;;  %p192_p2 = scmp.eq.s32.totalorder %s1110_s28, 1 }
   0x9   : > { %p197_p3 = scmp.ne.s32.totalorder %s1031_s25, %s1027_s24  ;;  %p198_p4 = scmp.eq.s32.totalorder %s671_s29, 1 }
   0xa   : > { %s1125_s10 = scalar_select %p179_p1, %s1035_s26, %s181_s8  }
   0xb   : > { %p1127_p5 = por %p192_p2, %p191_p0  ;;  %p1131_p6 = por %p198_p4, %p197_p3 }
   0xc   : > { %1303 = sst [smem:[#allocation11_spill]] %s1125_s10  ;;  %p672_p7 = scmp.ge.s32.totalorder %s1039_s27, 1 }
   0xd   : > { %s1304_s11 = scalar_select %p1127_p5, 1, 0 }
   0xe   : > { %s1305_s12 = scalar_select %p1131_p6, 1, 0 }
   0xf   : > { %p205_p8 = scmp.lt.s32.totalorder %s1039_s27, 3  ;;  %p1300_p9 = scmp.eq.s32.totalorder %s1110_s28, 0 }
  0x10   : > { %s1041_s14 = smov [#allocation2]   ;;  %s1042_s17 = smov [#allocation5]  }
  0x11   : > { %p1138_p10 = pnand %p672_p7, %p205_p8  ;;  %s223_s15 = sshll.u32 %s1041_s14, 4  ;;  %s224_s15 = int_to_ptr.vmem [resolvable:$true] %s223_s15 }
  0x12   : > { %s239_s18 = sshll.u32 %s1042_s17, 4  ;;  %s913_s21 = scalar_lea.hbm %s1295_s3, 2048  ;;  %s1150_s18 = int_to_ptr.vmem [resolvable:$true] %s239_s18 }
  0x13   : > { %s1306_s13 = scalar_select %p1138_p10, 1, 0 }
  0x14   : > { %p858_p11 = pneg %p1138_p10  ;;  %p914_p13 = scmp.ne.s32.totalorder %s1295_s3, %s913_s21 }
  0x15   : > { %p920_p3 = scmp.lt.u32.totalorder %s913_s21, %s1295_s3 }
  0x16   : > { %p1146_p12 = pnand %p1300_p9, %p858_p11 }
  0x18   : > { %p915_p0 = pneg %p1146_p12 }
  0x1a   : > { %p916_p1 = pnand %p915_p0, %p914_p13 }
  0x1c   : > { %p917_p2 = pneg %p916_p1 }
  0x1e   : > { %p922_p4 = pnand %p920_p3, %p917_p2 }
  0x20   : > { %925 = shalt.err (!%p922_p4)
}
  0x21   : > { %s926_s9 = scalar_lea.vmem %s224_s15, 2048  ;;  %p934_p9 = scmp.lt.s32.totalorder %s224_s15, %s224_s15 }
  0x22   : > { %p927_p7 = scmp.ne.s32.totalorder %s224_s15, %s926_s9  ;;  %p935_p6 = scmp.lt.s32.totalorder %s926_s9, %s926_s9 }
  0x24   : > { %p929_p8 = pnand %p927_p7, %p915_p0  ;;  %p936_p5 = por %p935_p6, %p934_p9 }
  0x26   : > { %p930_p11 = pneg %p929_p8 }
  0x28   : > { %p937_p10 = pnand %p936_p5, %p930_p11 }
  0x2a   : > { %940 = shalt.err (!%p937_p10)
}
  0x2b   : > { %s1043_s14 = smov 128   ;;  %s1044_s17 = smov 8  }
  0x2c   : > { %861 = dma.hbm_to_vmem [thread:$0]  (!%p1146_p12), %s1295_s3, 2048, %s224_s15, [#allocation3], %s1043_s14, %s1043_s14, %s1044_s17  }
  0x2d   : > { %s941_s23 = scalar_lea.hbm %s1297_s5, 2048 }
  0x2e   : > { %p942_p13 = scmp.ne.s32.totalorder %s1297_s5, %s941_s23  ;;  %p948_p9 = scmp.lt.u32.totalorder %s941_s23, %s1297_s5 }
  0x30   : > { %p944_p5 = pnand %p942_p13, %p915_p0 }
  0x32   : > { %p945_p6 = pneg %p944_p5 }
  0x34   : > { %p950_p10 = pnand %p948_p9, %p945_p6 }
  0x36   : > { %953 = shalt.err (!%p950_p10)
}
  0x37   : > { %s954_s15 = scalar_lea.vmem %s1150_s18, 2048  ;;  %p962_p4 = scmp.lt.s32.totalorder %s1150_s18, %s1150_s18 }
  0x38   : > { %p955_p1 = scmp.ne.s32.totalorder %s1150_s18, %s954_s15  ;;  %p963_p7 = scmp.lt.s32.totalorder %s954_s15, %s954_s15 }
  0x3a   : > { %p957_p2 = pnand %p955_p1, %p915_p0  ;;  %p964_p8 = por %p963_p7, %p962_p4 }
  0x3c   : > { %p958_p3 = pneg %p957_p2 }
  0x3e   : > { %p965_p11 = pnand %p964_p8, %p958_p3 }
  0x40   : > { %968 = shalt.err (!%p965_p11)
}
  0x41   : > { %864 = dma.hbm_to_vmem [thread:$0]  (!%p1146_p12), %s1297_s5, 2048, %s1150_s18, [#allocation6], %s1043_s14, %s1043_s14, %s1044_s17  }
  0x42   : > { %p1308_p13 = scmp.ne.s32.totalorder %s1306_s13, 0 }
  0x43   : > { %p1309_p5 = scmp.eq.s32.totalorder (!%p1308_p13), %s1110_s28, 0 }
  0x44   : > { %265 = sbr.rel (%p1308_p13) target bundleno = 747 (0x2eb), region = 48 }
  0x4b   : > { %1014 = dma.done.wait (%p1309_p5), [#allocation3], 2048   ;;  %p1310_p0 = pmov %p1309_p5 }
  0x4d   : > { %1016 = vsyncadd (%p1310_p0), [#allocation3], 4294965248  ;;  %p1311_p6 = pmov %p1310_p0 }
  0x4e   : > { %p1312_p9 = pmov %p1310_p0 }
  0x4f   : > { %1018 = dma.done.wait (%p1311_p6), [#allocation6], 2048  }
  0x50   : > { %1020 = vsyncadd (%p1312_p9), [#allocation6], 4294965248  ;;  %p300_p10 = scmp.lt.s32.totalorder %s1110_s28, 1  ;;  %v1045_v0 = vmov 0.0   ;;  %vm1046_vm0 = vmmov 0   ;;  %v1047_v1 = vmov 0.0|0.0  }
  0x51   : > { %725 = vmatprep.subr.mxu0 %v1045_v0  ;;  %727 = vmatprep.mubr.msk.f32.mxu0 %vm1046_vm0, %v1045_v0  ;;  %vm313_vm1 = vcmask 64512   ;;  %v305_v2 = vld [vmem:[%s1293_s1] sm:$0xff]  ;;  %v389_v5 = vld [vmem:[#allocation2 + $0x8] sm:$0xff]  ;;  %v390_v6 = vld [vmem:[#allocation2 + $0x10] sm:$0xff]  ;;  %s297_s9 = sand.u32 1, %s1031_s25   ;;  %p1313_p1 = scmp.ne.s32.totalorder %s1304_s11, 0 }
  0x52   : > { %s301_s13 = scalar_select %p300_p10, %s1110_s28, 1  ;;  %800 = vmatprep.subr.bf16.mxu1 %v1047_v1  ;;  %762 = vmatprep.mubr.msk.f32.mxu1 %vm1046_vm0, %v1045_v0  ;;  %v388_v4 = vld [vmem:[#allocation2] sm:$0xff]  ;;  %v391_v7 = vld [vmem:[#allocation2 + $0x18] sm:$0xff]  ;;  %v393_v11 = vld [vmem:[#allocation2 + $0x28] sm:$0xff] }
  0x53   : > { %726 = vmatpush3.msra.mxu0 %v305_v2  ;;  %v801_v8 = vpack.c.bf16 %v389_v5, %v388_v4  ;;  %v804_v9 = vpack.c.bf16 %v391_v7, %v390_v6  ;;  %v392_v10 = vld [vmem:[#allocation2 + $0x20] sm:$0xff]  ;;  %v394_v13 = vld [vmem:[#allocation2 + $0x30] sm:$0xff]  ;;  %v395_v14 = vld [vmem:[#allocation2 + $0x38] sm:$0xff]  ;;  %s679_s15 = sshll.u32 %s297_s9, 3  ;;  %s577_s21 = scalar_lea.sflag [#allocation4], %s297_s9 }
  0x54   : > { %s680_s16 = sshll.u32 %s301_s13, 3  ;;  %824 = vmatprep.subr.bf16.mxu0 %v1047_v1  ;;  %v807_v12 = vpack.c.bf16 %v393_v11, %v392_v10  ;;  %v810_v15 = vpack.c.bf16 %v395_v14, %v394_v13  ;;  %v396_v16 = vld [vmem:[#allocation2 + $0x40] sm:$0xff]  ;;  %v397_v17 = vld [vmem:[#allocation2 + $0x48] sm:$0xff]  ;;  %v398_v19 = vld [vmem:[#allocation2 + $0x50] sm:$0xff]  ;;  %s686_s13 = sshll.u32 %s1110_s28, 7 }
  0x55   : > { %s303_s17 = scalar_lea.vmem %s1292_s0, %s680_s16  ;;  %802 = vmatpush3.bf16.msra.mxu1 %v801_v8  ;;  %v813_v18 = vpack.c.bf16 %v397_v17, %v396_v16  ;;  %v399_v20 = vld [vmem:[#allocation2 + $0x58] sm:$0xff]  ;;  %v400_v22 = vld [vmem:[#allocation2 + $0x60] sm:$0xff]  ;;  %v401_v23 = vld [vmem:[#allocation2 + $0x68] sm:$0xff]  ;;  %s299_s16 = scalar_lea.vmem [#allocation7], %s679_s15 }
  0x56   : > { %v304_v3 = vld [vmem:[%s303_s17] sm:$0xff]  ;;  %803 = vmatprep.subr.bf16.mxu1 %v1047_v1  ;;  %v816_v21 = vpack.c.bf16 %v399_v20, %v398_v19  ;;  %v819_v24 = vpack.c.bf16 %v401_v23, %v400_v22  ;;  %v402_v25 = vld [vmem:[#allocation2 + $0x70] sm:$0xff]  ;;  %v403_v26 = vld [vmem:[#allocation2 + $0x78] sm:$0xff]  ;;  %s590_s18 = sshll.u32 %s299_s16, 4  ;;  %s1250_s20 = scalar_lea.hbm %s1299_s7, %s686_s13  ;;  %s1252_s18 = int_to_ptr.vmem [resolvable:$true] %s590_s18 }
  0x57   : > { %728 = vmatmul.mubr.msk.f32.vlgmr.msra.gmra.mrb[0].mxu0 %vm313_vm1, %v304_v3  ;;  %v822_v27 = vpack.c.bf16 %v403_v26, %v402_v25  ;;  %v482_v28 = vld [vmem:[#allocation5] sm:$0xff]  ;;  %v483_v29 = vld [vmem:[#allocation5 + $0x8] sm:$0xff]  ;;  %v484_v30 = vld [vmem:[#allocation5 + $0x10] sm:$0xff]  ;;  %s969_s22 = scalar_lea.vmem %s1252_s18, 128  ;;  %s1048_s28 = smov [#allocation7]  }
  0x58   : > { %797 = vmatprep.mubr.msk.f32.mxu0 %vm1046_vm0, %v1045_v0  ;;  %v825_v31 = vpack.c.bf16 %v483_v29, %v482_v28  ;;  %v485_v32 = vld [vmem:[#allocation5 + $0x18] sm:$0xff]  ;;  %v486_v34 = vld [vmem:[#allocation5 + $0x20] sm:$0xff]  ;;  %v487_v35 = vld [vmem:[#allocation5 + $0x28] sm:$0xff]  ;;  %p970_p12 = scmp.ne.s32.totalorder %s1252_s18, %s969_s22  ;;  %s973_s23 = sshll.u32 %s1048_s28, 4  ;;  %s974_s23 = int_to_ptr.vmem [resolvable:$false] %s973_s23 }
  0x59   : > { %805 = vmatpush3.bf16.msra.mxu1 %v804_v9  ;;  %v828_v33 = vpack.c.bf16 %v485_v32, %v484_v30  ;;  %v831_v36 = vpack.c.bf16 %v487_v35, %v486_v34  ;;  %v488_v37 = vld [vmem:[#allocation5 + $0x30] sm:$0xff]  ;;  %v489_v38 = vld [vmem:[#allocation5 + $0x38] sm:$0xff]  ;;  %v490_v40 = vld [vmem:[#allocation5 + $0x40] sm:$0xff]  ;;  %s975_s29 = scalar_lea.vmem %s974_s23, 256  ;;  %p976_p4 = scmp.lt.s32.totalorder %s1252_s18, %s974_s23 }
  0x5a   : > { %806 = vmatprep.subr.bf16.mxu1 %v1047_v1  ;;  %826 = vmatpush3.bf16.msra.mxu0 %v825_v31  ;;  %v834_v39 = vpack.c.bf16 %v489_v38, %v488_v37  ;;  %v491_v41 = vld [vmem:[#allocation5 + $0x48] sm:$0xff]  ;;  %v492_v43 = vld [vmem:[#allocation5 + $0x50] sm:$0xff]  ;;  %v493_v44 = vld [vmem:[#allocation5 + $0x58] sm:$0xff]  ;;  %p971_p2 = pnand %p970_p12, %p1313_p1  ;;  %p977_p7 = scmp.lt.s32.totalorder %s975_s29, %s969_s22 }
  0x5b   : > { %827 = vmatprep.subr.bf16.mxu0 %v1047_v1  ;;  %v837_v42 = vpack.c.bf16 %v491_v41, %v490_v40  ;;  %v840_v45 = vpack.c.bf16 %v493_v44, %v492_v43  ;;  %v494_v46 = vld [vmem:[#allocation5 + $0x60] sm:$0xff]  ;;  %v495_v47 = vld [vmem:[#allocation5 + $0x68] sm:$0xff]  ;;  %v496_v54 = vld [vmem:[#allocation5 + $0x70] sm:$0xff] }
  0x5c   : > { %v843_v48 = vpack.c.bf16 %v495_v47, %v494_v46  ;;  %v681_v49 = vld [vmem:[%s1294_s2] ss:$0 sm:$0xff]  ;;  %v497_v55 = vld [vmem:[#allocation5 + $0x78] sm:$0xff]  ;;  %p972_p3 = pneg %p971_p2  ;;  %p978_p8 = por %p977_p7, %p976_p4 }
  0x5d   : > { %808 = vmatpush3.bf16.msra.mxu1 %v807_v12  ;;  %v846_v56 = vpack.c.bf16 %v497_v55, %v496_v54  ;;  %v683_v57 = vld [vmem:[%s1296_s4] ss:$0 sm:$0xff] }
  0x5e   : > { %809 = vmatprep.subr.bf16.mxu1 %v1047_v1  ;;  %829 = vmatpush3.bf16.msra.mxu0 %v828_v33  ;;  %v684_v62 = vld [vmem:[%s1298_s6] ss:$0 sm:$0xff]  ;;  %p979_p11 = pnand %p978_p8, %p972_p3 }
  0x5f   : > { %830 = vmatprep.subr.bf16.mxu0 %v1047_v1 }
  0x61   : > { %811 = vmatpush3.bf16.msra.mxu1 %v810_v15 }
  0x62   : > { %812 = vmatprep.subr.bf16.mxu1 %v1047_v1  ;;  %832 = vmatpush3.bf16.msra.mxu0 %v831_v36 }
  0x63   : > { %833 = vmatprep.subr.bf16.mxu0 %v1047_v1 }
  0x65   : > { %814 = vmatpush3.bf16.msra.mxu1 %v813_v18 }
  0x66   : > { %815 = vmatprep.subr.bf16.mxu1 %v1047_v1  ;;  %835 = vmatpush3.bf16.msra.mxu0 %v834_v39 }
  0x67   : > { %836 = vmatprep.subr.bf16.mxu0 %v1047_v1 }
  0x69   : > { %817 = vmatpush3.bf16.msra.mxu1 %v816_v21 }
  0x6a   : > { %818 = vmatprep.subr.bf16.mxu1 %v1047_v1  ;;  %838 = vmatpush3.bf16.msra.mxu0 %v837_v42 }
  0x6b   : > { %839 = vmatprep.subr.bf16.mxu0 %v1047_v1 }
  0x6d   : > { %820 = vmatpush3.bf16.msra.mxu1 %v819_v24 }
  0x6e   : > { %821 = vmatprep.subr.bf16.mxu1 %v1047_v1  ;;  %841 = vmatpush3.bf16.msra.mxu0 %v840_v45 }
  0x6f   : > { %842 = vmatprep.subr.bf16.mxu0 %v1047_v1 }
  0x71   : > { %823 = vmatpush3.bf16.msra.mxu1 %v822_v27 }
  0x72   : > { %844 = vmatpush3.bf16.msra.mxu0 %v843_v48 }
  0x73   : > { %845 = vmatprep.subr.bf16.mxu0 %v1047_v1 }
  0x76   : > { %847 = vmatpush3.bf16.msra.mxu0 %v846_v56 }
 0x12a   : > { %v383_v50 = vpop.f32.mrb[0].mxu0 }
 0x12b   : > { %v384_v51 = vadd.f32 %v681_v49, %v383_v50  ;;  %v729_v52 = vpop.f32.mrb[1].mxu0 }
 0x12d   : > { %v387_v53 = vmax.f32 %v384_v51, 0.0 }
 0x12f   : > { %763 = vmatmul.mubr.f32.vlgmr.msra.gmra.mrb[0].mxu1 %v387_v53 }
 0x202   : > { %v477_v58 = vpop.f32.mrb[0].mxu1 }
 0x203   : > { %v478_v59 = vadd.f32 %v683_v57, %v477_v58  ;;  %v764_v60 = vpop.f32.mrb[1].mxu1 }
 0x205   : > { %v481_v61 = vmax.f32 %v478_v59, 0.0 }
 0x207   : > { %798 = vmatmul.mubr.f32.vlgmr.msra.gmra.mrb[2].mxu0 %v481_v61 }
 0x2da   : > { %v571_v63 = vpop.f32.mrb[2].mxu0 }
 0x2db   : > { %v572_v0 = vadd.f32 %v684_v62, %v571_v63  ;;  %v799_v1 = vpop.f32.mrb[3].mxu0 }
 0x2dd   : > { %575 = vst [vmem:[%s299_s16] sm:$0xff] %v572_v0 }
 0x2de   : > { %982 = shalt.err (!%p979_p11)
}
 0x2df   : > { %s983_s8 = scalar_lea.hbm %s1250_s20, 128  ;;  %s987_s10 = scalar_lea.hbm %s1299_s7, 256 }
 0x2e0   : > { %p984_p13 = scmp.ne.s32.totalorder %s1250_s20, %s983_s8  ;;  %p988_p6 = scmp.lt.u32.totalorder %s1250_s20, %s1299_s7 }
 0x2e1   : > { %p989_p9 = scmp.lt.u32.totalorder %s987_s10, %s983_s8  ;;  %p991_p12 = scmp.lt.u32.totalorder %s983_s8, %s1250_s20 }
 0x2e2   : > { %p985_p5 = pnand %p984_p13, %p1313_p1 }
 0x2e3   : > { %p990_p10 = por %p989_p9, %p988_p6 }
 0x2e4   : > { %p986_p0 = pneg %p985_p5 }
 0x2e5   : > { %p992_p2 = por %p991_p12, %p990_p10 }
 0x2e7   : > { %p993_p3 = pnand %p992_p2, %p986_p0 }
 0x2e9   : > { %996 = shalt.err (!%p993_p3)
}
 0x2ea   : > { %856 = dma.vmem_to_hbm [thread:$0]  (%p1313_p1), %s1252_s18, 128, %s1250_s20, %s577_s21  }
 0x2eb PF: > { %p873_p4 = scmp.ge.s32.totalorder %s1039_s27, 2  ;;  %s602_s16 = sand.u32 1, %s1027_s24  }
 0x2ec   : > { %p1314_p7 = scmp.ne.s32.totalorder %s1305_s12, 0  ;;  %s603_s14 = scalar_lea.sflag [#allocation4], %s602_s16 }
 0x2ee   : > { %p866_p8 = pnand %p873_p4, %p1314_p7 }
 0x2f0   : > { %1022 = dma.done.wait (!%p866_p8), %s603_s14, 128  }
 0x2f1   : > { %1024 = vsyncadd (!%p866_p8), %s603_s14, 4294967168  ;;  %s1315_s17 = sld [smem:[#allocation11_spill]]  ;;  %p19_p11 = scmp.ge.s32.totalorder %s1114_s30, 4  }
 0x2f2   : > { %s1316_s24 = smov %s1031_s25  ;;  %s1317_s25 = smov %s1035_s26 }
 0x2f3   : > { %s1319_s27 = smov %s1114_s30  ;;  %21 = sbr.rel (!%p19_p11) target bundleno = 5 (0x5), region = 92 }
 0x2f7   : > { %s1318_s26 = smov %s1315_s17 }
 0x2fa   :  { %608 = vsyncpa [#allocation3], 1 }
 0x2fb   :  { %610 = vsyncpa [#allocation3 + $0x1], 1 }
 0x2fc   :  { %611 = vsyncpa [#allocation6], 1 }
 0x2fd   :  { %612 = vsyncpa [#allocation4], 1 }
 0x2fe   :  { %614 = vsyncpa [#allocation4 + $0x1], 1 }

</bundles_post_ra>
